<compile_context>
chip_gen: v7x
topology: tpu7x:2x2x1
jax: 0.10.0
libtpu: 0.0.40
codegen_flags: <defaults>
</compile_context>

<pallas_src>
import jax
import jax.numpy as jnp
from jax.experimental import pallas as pl
from jax.experimental.pallas import tpu as pltpu


def mlp_kernel(x_ref,
               w1_ref, b1_ref,
               w2_ref, b2_ref,
               w3_ref, b3_ref,
               w4_ref, b4_ref,
               o_ref):
    # Activations are [features, tile_b]: batch on the lane axis (lane-dense).
    x = x_ref[...]                       # [2, tile_b] f32
    w1 = w1_ref[...]                     # [H, 2] f32

    # Layer 1: contraction depth is only 2 -> keep it off the MXU.
    # h1[h, b] = w1[h,0]*x[0,b] + w1[h,1]*x[1,b] + b1[h]   (pure VPU)
    h = w1[:, 0:1] * x[0:1, :] + w1[:, 1:2] * x[1:2, :] + b1_ref[...]
    h = jnp.maximum(h, 0.0)              # [H, tile_b] f32

    # Layers 2 & 3: HxH matmuls on the MXU with bf16 operands (bf16-native on
    # v5e/v6e/v7x MXUs) and f32 accumulation.  Bias add / ReLU stay f32.
    h = jnp.dot(w2_ref[...], h.astype(jnp.bfloat16),
                preferred_element_type=jnp.float32) + b2_ref[...]
    h = jnp.maximum(h, 0.0)
    h = jnp.dot(w3_ref[...], h.astype(jnp.bfloat16),
                preferred_element_type=jnp.float32) + b3_ref[...]
    h = jnp.maximum(h, 0.0)

    # Layer 4: [2,H] @ [H,tile_b] -> [2, tile_b]; kept f32 (only 2 result rows,
    # sits in MXU slack behind layers 2-3).  Lane-dense output store.
    out = jnp.dot(w4_ref[...], h, preferred_element_type=jnp.float32) + b4_ref[...]
    o_ref[...] = out.astype(o_ref.dtype)


def _pick_tile_b(N):
    """Smallest even tile count whose tile width (multiple of 128) is <= 8192.

    Wide tiles amortize the ~0.35 us per-grid-step overhead; an even grid of
    >= 2 tiles keeps both v7x TensorCores busy on the "parallel" batch axis.
    """
    n_tiles = 2
    while True:
        per_tile = -(-N // n_tiles)                 # ceil(N / n_tiles)
        tile_b = 128 * (-(-per_tile // 128))        # round up to 128 lanes
        tile_b = max(128, tile_b)
        if tile_b <= 8192:
            return tile_b
        n_tiles += 2


def generator_toy_forward(x, params, *, tile_b=None):
    """x: [N, 2] float32 (PyTorch layout).

    params holds PyTorch-native weights W: [out_features, in_features] and
    biases b: [out_features, 1].  Returns [N, 2], same math as the nn.Module.
    """
    N, in_dim = x.shape
    assert in_dim == 2

    if tile_b is None:
        tile_b = _pick_tile_b(N)
    else:
        tile_b = max(128, (tile_b // 128) * 128)

    n_tiles = max(1, -(-N // tile_b))
    n_pad = n_tiles * tile_b

    # Batch-on-lanes layout: [2, n_pad].  Pad only when needed, with a single
    # jnp.pad (no zeros + scatter pass); padded tail columns are sliced off
    # after the kernel so their (nonzero post-bias) values never matter.
    x_t = x.T
    if n_pad != N:
        x_t = jnp.pad(x_t, ((0, 0), (0, n_pad - N)))

    w1, b1 = params["w1"], params["b1"]   # [H, 2],  [H, 1]
    w2, b2 = params["w2"], params["b2"]   # [H, H],  [H, 1]
    w3, b3 = params["w3"], params["b3"]   # [H, H],  [H, 1]
    w4, b4 = params["w4"], params["b4"]   # [2, H],  [2, 1]

    # One-time host-side bf16 cast of the MXU weight operands; they stay
    # VMEM-resident across grid steps so there is no per-step convert.
    w2b = w2.astype(jnp.bfloat16)
    w3b = w3.astype(jnp.bfloat16)

    def rep(arr):
        # Full-array block with constant block index: weights/biases stay
        # VMEM-resident across grid steps (no re-DMA per tile).
        shape = arr.shape
        return pl.BlockSpec(shape, lambda i, _s=shape: (0,) * len(_s))

    out_t = pl.pallas_call(
        mlp_kernel,
        out_shape=jax.ShapeDtypeStruct((2, n_pad), x.dtype),
        grid_spec=pltpu.PrefetchScalarGridSpec(
            num_scalar_prefetch=0,
            grid=(n_tiles,),
            in_specs=[
                pl.BlockSpec((2, tile_b), lambda i: (0, i)),
                rep(w1), rep(b1),
                rep(w2b), rep(b2),
                rep(w3b), rep(b3),
                rep(w4), rep(b4),
            ],
            out_specs=pl.BlockSpec((2, tile_b), lambda i: (0, i)),
        ),
        compiler_params=pltpu.CompilerParams(
            dimension_semantics=("parallel",)),
    )(x_t, w1, b1, w2b, b2, w3b, b3, w4, b4)

    # Back to PyTorch layout; drop padded columns.
    return out_t[:, :N].T


def init_params(key, hidden_dim):
    """PyTorch-native shapes: W [out, in], b [out, 1].

    Uniform(-1/sqrt(fan_in), 1/sqrt(fan_in)) like nn.Linear's default init.
    """
    dims = [(hidden_dim, 2), (hidden_dim, hidden_dim),
            (hidden_dim, hidden_dim), (2, hidden_dim)]
    params = {}
    for idx, (fan_out, fan_in) in enumerate(dims, start=1):
        key, kw, kb = jax.random.split(key, 3)
        bound = 1.0 / (fan_in ** 0.5)
        params[f"w{idx}"] = jax.random.uniform(
            kw, (fan_out, fan_in), jnp.float32, -bound, bound)
        params[f"b{idx}"] = jax.random.uniform(
            kb, (fan_out, 1), jnp.float32, -bound, bound)
    return params


def reference_forward(x, params):
    # Plain-XLA f32 reference in PyTorch layout: y = x @ W.T + b.T
    h = jnp.maximum(x @ params["w1"].T + params["b1"].T, 0.0)
    h = jnp.maximum(h @ params["w2"].T + params["b2"].T, 0.0)
    h = jnp.maximum(h @ params["w3"].T + params["b3"].T, 0.0)
    return h @ params["w4"].T + params["b4"].T


if __name__ == "__main__":
    hidden_dim = 32
    batch = 256   # two 128-lane tiles -> grid = 2 (even, feeds both v7x TCs)

    key = jax.random.PRNGKey(0)
    key, kx = jax.random.split(key)
    x = jax.random.normal(kx, (batch, 2), jnp.float32)
    params = init_params(key, hidden_dim)

    out = generator_toy_forward(x, params)
    out = jax.block_until_ready(out)

    ref = reference_forward(x, params)
    assert out.shape == (batch, 2)
    # Tolerance relaxed vs the pure-f32 version: layers 2 & 3 use bf16 MXU
    # operands (f32 accumulation), which is well within a few 1e-3 relative
    # error at H=32.
    assert jnp.allclose(out, ref, atol=5e-2, rtol=5e-2), "mismatch vs reference"

    print("KERNEL_OK")
</pallas_src>

<mosaic_0001>
module attributes {stable_mosaic.version = 11 : i64} {
  func.func @mlp_kernel(%arg0: i32, %arg1: memref<2x128xf32, #tpu.memory_space<vmem>>, %arg2: memref<32x2xf32, #tpu.memory_space<vmem>>, %arg3: memref<32x1xf32, #tpu.memory_space<vmem>>, %arg4: memref<32x32xbf16, #tpu.memory_space<vmem>>, %arg5: memref<32x1xf32, #tpu.memory_space<vmem>>, %arg6: memref<32x32xbf16, #tpu.memory_space<vmem>>, %arg7: memref<32x1xf32, #tpu.memory_space<vmem>>, %arg8: memref<2x32xf32, #tpu.memory_space<vmem>>, %arg9: memref<2x1xf32, #tpu.memory_space<vmem>>, %arg10: memref<2x128xf32, #tpu.memory_space<vmem>>) attributes {dimension_semantics = [#tpu.dimension_semantics<parallel>], iteration_bounds = array<i64: 2>, scalar_prefetch = 0 : i64, scratch_operands = 0 : i64, tpu.core_type = #tpu.core_type<tc>, window_params = [{transform_indices = @transform_0, window_bounds = array<i64: 2, 128>}, {pipeline_mode = #tpu.pipeline_mode<synchronous>, transform_indices = @transform_1, window_bounds = array<i64: 32, 2>}, {pipeline_mode = #tpu.pipeline_mode<synchronous>, transform_indices = @transform_2, window_bounds = array<i64: 32, 1>}, {pipeline_mode = #tpu.pipeline_mode<synchronous>, transform_indices = @transform_3, window_bounds = array<i64: 32, 32>}, {pipeline_mode = #tpu.pipeline_mode<synchronous>, transform_indices = @transform_4, window_bounds = array<i64: 32, 1>}, {pipeline_mode = #tpu.pipeline_mode<synchronous>, transform_indices = @transform_5, window_bounds = array<i64: 32, 32>}, {pipeline_mode = #tpu.pipeline_mode<synchronous>, transform_indices = @transform_6, window_bounds = array<i64: 32, 1>}, {pipeline_mode = #tpu.pipeline_mode<synchronous>, transform_indices = @transform_7, window_bounds = array<i64: 2, 32>}, {pipeline_mode = #tpu.pipeline_mode<synchronous>, transform_indices = @transform_8, window_bounds = array<i64: 2, 1>}, {transform_indices = @transform_9, window_bounds = array<i64: 2, 128>}]} {
    %c0 = arith.constant 0 : index
    %c0_0 = arith.constant 0 : index
    %0 = vector.load %arg1[%c0, %c0_0] : memref<2x128xf32, #tpu.memory_space<vmem>>, vector<2x128xf32>
    %c0_1 = arith.constant 0 : index
    %c0_2 = arith.constant 0 : index
    %1 = vector.load %arg2[%c0_1, %c0_2] : memref<32x2xf32, #tpu.memory_space<vmem>>, vector<32x2xf32>
    %2 = vector.extract_strided_slice %1 {offsets = [0, 0], sizes = [32, 1], strides = [1, 1]} : vector<32x2xf32> to vector<32x1xf32>
    %3 = vector.extract_strided_slice %0 {offsets = [0, 0], sizes = [1, 128], strides = [1, 1]} : vector<2x128xf32> to vector<1x128xf32>
    %4 = vector.broadcast %2 : vector<32x1xf32> to vector<32x128xf32>
    %5 = vector.broadcast %3 : vector<1x128xf32> to vector<32x128xf32>
    %6 = arith.mulf %4, %5 : vector<32x128xf32>
    %7 = vector.extract_strided_slice %1 {offsets = [0, 1], sizes = [32, 1], strides = [1, 1]} : vector<32x2xf32> to vector<32x1xf32>
    %8 = vector.extract_strided_slice %0 {offsets = [1, 0], sizes = [1, 128], strides = [1, 1]} : vector<2x128xf32> to vector<1x128xf32>
    %9 = vector.broadcast %7 : vector<32x1xf32> to vector<32x128xf32>
    %10 = vector.broadcast %8 : vector<1x128xf32> to vector<32x128xf32>
    %11 = arith.mulf %9, %10 : vector<32x128xf32>
    %12 = arith.addf %6, %11 : vector<32x128xf32>
    %c0_3 = arith.constant 0 : index
    %c0_4 = arith.constant 0 : index
    %13 = vector.load %arg3[%c0_3, %c0_4] : memref<32x1xf32, #tpu.memory_space<vmem>>, vector<32x1xf32>
    %14 = vector.broadcast %13 : vector<32x1xf32> to vector<32x128xf32>
    %15 = arith.addf %12, %14 : vector<32x128xf32>
    %cst = arith.constant 0.000000e+00 : f32
    %16 = vector.broadcast %cst : f32 to vector<32x128xf32>
    %17 = arith.maximumf %15, %16 : vector<32x128xf32>
    %c0_5 = arith.constant 0 : index
    %c0_6 = arith.constant 0 : index
    %18 = vector.load %arg4[%c0_5, %c0_6] : memref<32x32xbf16, #tpu.memory_space<vmem>>, vector<32x32xbf16>
    %19 = arith.truncf %17 : vector<32x128xf32> to vector<32x128xbf16>
    %cst_7 = arith.constant dense<0.000000e+00> : vector<32x128xf32>
    %20 = tpu.matmul %18, %19, %cst_7 {dimension_numbers = #tpu.dot_dimension_numbers<[1], [0], [0], [1], [0, 0, 1, 1], [], []>} : vector<32x32xbf16>, vector<32x128xbf16>, vector<32x128xf32> -> vector<32x128xf32>
    %c0_8 = arith.constant 0 : index
    %c0_9 = arith.constant 0 : index
    %21 = vector.load %arg5[%c0_8, %c0_9] : memref<32x1xf32, #tpu.memory_space<vmem>>, vector<32x1xf32>
    %22 = vector.broadcast %21 : vector<32x1xf32> to vector<32x128xf32>
    %23 = arith.addf %20, %22 : vector<32x128xf32>
    %cst_10 = arith.constant 0.000000e+00 : f32
    %24 = vector.broadcast %cst_10 : f32 to vector<32x128xf32>
    %25 = arith.maximumf %23, %24 : vector<32x128xf32>
    %c0_11 = arith.constant 0 : index
    %c0_12 = arith.constant 0 : index
    %26 = vector.load %arg6[%c0_11, %c0_12] : memref<32x32xbf16, #tpu.memory_space<vmem>>, vector<32x32xbf16>
    %27 = arith.truncf %25 : vector<32x128xf32> to vector<32x128xbf16>
    %cst_13 = arith.constant dense<0.000000e+00> : vector<32x128xf32>
    %28 = tpu.matmul %26, %27, %cst_13 {dimension_numbers = #tpu.dot_dimension_numbers<[1], [0], [0], [1], [0, 0, 1, 1], [], []>} : vector<32x32xbf16>, vector<32x128xbf16>, vector<32x128xf32> -> vector<32x128xf32>
    %c0_14 = arith.constant 0 : index
    %c0_15 = arith.constant 0 : index
    %29 = vector.load %arg7[%c0_14, %c0_15] : memref<32x1xf32, #tpu.memory_space<vmem>>, vector<32x1xf32>
    %30 = vector.broadcast %29 : vector<32x1xf32> to vector<32x128xf32>
    %31 = arith.addf %28, %30 : vector<32x128xf32>
    %cst_16 = arith.constant 0.000000e+00 : f32
    %32 = vector.broadcast %cst_16 : f32 to vector<32x128xf32>
    %33 = arith.maximumf %31, %32 : vector<32x128xf32>
    %c0_17 = arith.constant 0 : index
    %c0_18 = arith.constant 0 : index
    %34 = vector.load %arg8[%c0_17, %c0_18] : memref<2x32xf32, #tpu.memory_space<vmem>>, vector<2x32xf32>
    %cst_19 = arith.constant dense<0.000000e+00> : vector<2x128xf32>
    %35 = tpu.matmul %34, %33, %cst_19 {dimension_numbers = #tpu.dot_dimension_numbers<[1], [0], [0], [1], [0, 0, 1, 1], [], []>} : vector<2x32xf32>, vector<32x128xf32>, vector<2x128xf32> -> vector<2x128xf32>
    %c0_20 = arith.constant 0 : index
    %c0_21 = arith.constant 0 : index
    %36 = vector.load %arg9[%c0_20, %c0_21] : memref<2x1xf32, #tpu.memory_space<vmem>>, vector<2x1xf32>
    %37 = vector.broadcast %36 : vector<2x1xf32> to vector<2x128xf32>
    %38 = arith.addf %35, %37 : vector<2x128xf32>
    %c0_22 = arith.constant 0 : index
    %c0_23 = arith.constant 0 : index
    %39 = vector.load %arg10[%c0_22, %c0_23] : memref<2x128xf32, #tpu.memory_space<vmem>>, vector<2x128xf32>
    tpu.vector_store %arg10[%c0_22, %c0_23], %38 {strides = array<i32>} : memref<2x128xf32, #tpu.memory_space<vmem>>, vector<2x128xf32>,
    return
  }
  func.func @transform_0(%arg0: i32) -> (i32, i32) {
    %c0_i32 = arith.constant 0 : i32
    %c0_i32_0 = arith.constant 0 : i32
    return %c0_i32, %arg0 : i32, i32
  }
  func.func @transform_1(%arg0: i32) -> (i32, i32) {
    %c0_i32 = arith.constant 0 : i32
    %c0_i32_0 = arith.constant 0 : i32
    %c0_i32_1 = arith.constant 0 : i32
    return %c0_i32, %c0_i32_0 : i32, i32
  }
  func.func @transform_2(%arg0: i32) -> (i32, i32) {
    %c0_i32 = arith.constant 0 : i32
    %c0_i32_0 = arith.constant 0 : i32
    %c0_i32_1 = arith.constant 0 : i32
    return %c0_i32, %c0_i32_0 : i32, i32
  }
  func.func @transform_3(%arg0: i32) -> (i32, i32) {
    %c0_i32 = arith.constant 0 : i32
    %c0_i32_0 = arith.constant 0 : i32
    %c0_i32_1 = arith.constant 0 : i32
    return %c0_i32, %c0_i32_0 : i32, i32
  }
  func.func @transform_4(%arg0: i32) -> (i32, i32) {
    %c0_i32 = arith.constant 0 : i32
    %c0_i32_0 = arith.constant 0 : i32
    %c0_i32_1 = arith.constant 0 : i32
    return %c0_i32, %c0_i32_0 : i32, i32
  }
  func.func @transform_5(%arg0: i32) -> (i32, i32) {
    %c0_i32 = arith.constant 0 : i32
    %c0_i32_0 = arith.constant 0 : i32
    %c0_i32_1 = arith.constant 0 : i32
    return %c0_i32, %c0_i32_0 : i32, i32
  }
  func.func @transform_6(%arg0: i32) -> (i32, i32) {
    %c0_i32 = arith.constant 0 : i32
    %c0_i32_0 = arith.constant 0 : i32
    %c0_i32_1 = arith.constant 0 : i32
    return %c0_i32, %c0_i32_0 : i32, i32
  }
  func.func @transform_7(%arg0: i32) -> (i32, i32) {
    %c0_i32 = arith.constant 0 : i32
    %c0_i32_0 = arith.constant 0 : i32
    %c0_i32_1 = arith.constant 0 : i32
    return %c0_i32, %c0_i32_0 : i32, i32
  }
  func.func @transform_8(%arg0: i32) -> (i32, i32) {
    %c0_i32 = arith.constant 0 : i32
    %c0_i32_0 = arith.constant 0 : i32
    %c0_i32_1 = arith.constant 0 : i32
    return %c0_i32, %c0_i32_0 : i32, i32
  }
  func.func @transform_9(%arg0: i32) -> (i32, i32) {
    %c0_i32 = arith.constant 0 : i32
    %c0_i32_0 = arith.constant 0 : i32
    return %c0_i32, %arg0 : i32, i32
  }
}

</mosaic_0001>

<bundles_post_ra>
// kernel: tpu_custom_call.1
= control target key start
LH: loop header
LB: loop body
LE: loop exit
PB: predicated region body
PF: predicated region fallthrough
CT: control target
= control target key end

     0   :  { %14 = vsyncpa [#allocation3], 0  ;;  %s1185_s0 = inlined_call_operand.vmem [shape: f32[2,256], index: 0, kind: input, shape index: {}]   ;;  %s1186_s1 = inlined_call_operand.vmem [shape: f32[32,2], index: 1, kind: input, shape index: {}]   ;;  %s1187_s2 = inlined_call_operand.vmem [shape: f32[32,1], index: 2, kind: input, shape index: {}]   ;;  %s1188_s3 = inlined_call_operand.vmem [shape: bf16[32,32], index: 3, kind: input, shape index: {}]   ;;  %s1189_s4 = inlined_call_operand.vmem [shape: f32[32,1], index: 4, kind: input, shape index: {}]   ;;  %s1190_s5 = inlined_call_operand.vmem [shape: bf16[32,32], index: 5, kind: input, shape index: {}]   ;;  %s1191_s6 = inlined_call_operand.vmem [shape: f32[32,1], index: 6, kind: input, shape index: {}]   ;;  %s1192_s7 = inlined_call_operand.vmem [shape: f32[2,32], index: 7, kind: input, shape index: {}]   ;;  %s1193_s8 = inlined_call_operand.vmem [shape: f32[2,1], index: 8, kind: input, shape index: {}]   ;;  %s1194_s9 = inlined_call_operand.hbm [shape: f32[2,256], index: 9, kind: output, shape index: {}]  }
   0x1   :  { %16 = vsyncpa [#allocation3 + $0x1], 0  ;;  %s1014_s30 = smov 0   ;;  %s1016_s10 = smov 0  }
   0x2   :  { %s1018_s11 = smov 0   ;;  %s1020_s12 = smov 0  }
   0x3 LB: > { %s1035_s13 = sadd.s32 4294967295, %s956_s12   ;;  %s775_s14 = sadd.s32 4294967294, %s956_s12   ;;  %s956_s12 = sphi %s1020_s12, %s1200_s12   ;;  %s952_s11 = sphi %s1018_s11, %s1199_s11   ;;  %s948_s10 = sphi %s1016_s10, %s1198_s10   ;;  %s944_s30 = sphi %s1014_s30, %s1197_s30  }
   0x4   : > { %s1039_s15 = sadd.s32 1, %s956_s12   ;;  %s223_s16 = sadd.s32 1, %s952_s11 }
   0x5   : > { %s220_s17 = ssub.s32 %s956_s12, %s1039_s15  ;;  %p233_p0 = scmp.ne.s32.totalorder %s952_s11, %s948_s10 }
   0x6   : > { %p221_p1 = scmp.eq.s32.totalorder %s220_s17, 0  ;;  %p234_p2 = scmp.eq.s32.totalorder %s1035_s13, 1 }
   0x7   : > { %p239_p3 = scmp.ne.s32.totalorder %s948_s10, %s944_s30  ;;  %p240_p4 = scmp.eq.s32.totalorder %s775_s14, 1 }
   0x8   : > { %s1050_s18 = scalar_select %p221_p1, %s952_s11, %s223_s16  }
   0x9   : > { %p1052_p5 = por %p234_p2, %p233_p0  ;;  %p1056_p6 = por %p240_p4, %p239_p3 }
   0xa   : > { %p778_p7 = scmp.ge.s32.totalorder %s956_s12, 1  ;;  %p289_p8 = scmp.lt.s32.totalorder %s956_s12, 3 }
   0xc   : > { %p290_p9 = pnand %p778_p7, %p289_p8 }
   0xd   : > { %v332_v0 = vld [vmem:[%s1186_s1 + $0x10] sm:$0xff] (!%p290_p9)  ;;  %v330_v1 = vld [vmem:[%s1186_s1] sm:$0xff] (!%p290_p9)  ;;  %v958_v2 = vmov (!%p290_p9), 1   ;;  %v331_v3 = vld [vmem:[%s1186_s1 + $0x8] sm:$0xff] (!%p290_p9)  ;;  %v959_v4 = vmov (!%p290_p9), 0   ;;  %vm462_vm0 = vcmask (!%p290_p9), 261120   ;;  %v354_v20 = vlaneseq (!%p290_p9) }
   0xe   : > { %293 = sbr.rel (%p290_p9) target bundleno = 865 (0x361), region = 56  ;;  %886 = vset.pattern.permute.xlu0 (!%p290_p9), %v958_v2  ;;  %884 = vset.pattern.permute.xlu1 (!%p290_p9), %v958_v2  ;;  %v333_v5 = vld [vmem:[%s1186_s1 + $0x18] sm:$0xff] (!%p290_p9)  ;;  %v391_v6 = vld [vmem:[%s1187_s2 + $0x8] sm:$0xff] (!%p290_p9)  ;;  %v390_v7 = vld [vmem:[%s1187_s2] sm:$0xff] (!%p290_p9)  ;;  %p324_p10 = scmp.lt.s32.totalorder (!%p290_p9), %s1035_s13, 1  ;;  %vm961_vm1 = vmmov (!%p290_p9), 0  }
   0xf   : > { %371 = vperm.xlu0 (!%p290_p9), %886, %v332_v0   ;;  %363 = vperm.xlu1 (!%p290_p9), %884, %v330_v1   ;;  %v428_v8 = vld [vmem:[%s1189_s4] sm:$0xff] (!%p290_p9)  ;;  %v392_v9 = vld [vmem:[%s1187_s2 + $0x10] sm:$0xff] (!%p290_p9)  ;;  %v393_v11 = vld [vmem:[%s1187_s2 + $0x18] sm:$0xff] (!%p290_p9)  ;;  %v355_v23 = vshrl.u32 (!%p290_p9), %v354_v20, 7  ;;  %s791_s24 = sshll.u32 (!%p290_p9), %s1035_s13, 5 }
  0x10   : > { %v430_v10 = vld [vmem:[%s1189_s4 + $0x10] sm:$0xff] (!%p290_p9)  ;;  %v528_v12 = vld [vmem:[%s1191_s6] sm:$0xff] (!%p290_p9)  ;;  %v429_v13 = vld [vmem:[%s1189_s4 + $0x8] sm:$0xff] (!%p290_p9)  ;;  %s1143_s29 = scalar_lea.hbm (!%p290_p9), %s1194_s9, %s791_s24 }
  0x11   : > { %v530_v14 = vld [vmem:[%s1191_s6 + $0x10] sm:$0xff] (!%p290_p9)  ;;  %v431_v15 = vld [vmem:[%s1189_s4 + $0x18] sm:$0xff] (!%p290_p9)  ;;  %v622_v16 = vld [vmem:[%s1193_s8] sm:$0x3] (!%p290_p9)  ;;  %v356_v26 = vsub.s32 (!%p290_p9), 0, %v355_v23  ;;  %v380_v27 = vsub.s32 (!%p290_p9), 1, %v355_v23 }
  0x12   : > { %v890_v17 = vld [vmem:[%s1188_s3] sm:$0xff] (!%p290_p9)   ;;  %v529_v18 = vld [vmem:[%s1191_s6 + $0x8] sm:$0xff] (!%p290_p9)  ;;  %v531_v19 = vld [vmem:[%s1191_s6 + $0x18] sm:$0xff] (!%p290_p9) }
  0x13   : > { %887 = vset.pattern.permute.xlu0 (!%p290_p9), %v959_v4  ;;  %367 = vperm.xlu1 (!%p290_p9), %884, %v331_v3   ;;  %v891_v61 = vld [vmem:[%s1188_s3 + $0x8] sm:$0xff] (!%p290_p9)   ;;  %v892_v62 = vld [vmem:[%s1190_s5] sm:$0xff] (!%p290_p9)  }
  0x14   : > { %336 = vperm.xlu0 (!%p290_p9), %887, %v330_v1   ;;  %811 = vmatprep.mubr.msk.bf16.mxu0 (!%p290_p9), %vm462_vm0, %v890_v17  ;;  %v893_v17 = vld [vmem:[%s1190_s5 + $0x8] sm:$0xff] (!%p290_p9)  }
  0x15   : > { %s325_s21 = scalar_select %p324_p10, %s1035_s13, 1  ;;  %819 = vmatprep.mubr.msk.bf16.mxu1 %vm462_vm0, %v892_v62 }
  0x16   : > { %s963_s13 = smov [#allocation2]  }
  0x17   : > { %885 = vset.pattern.permute.xlu1 %v959_v4  ;;  %s780_s22 = sshll.u32 %s325_s21, 1  ;;  %s898_s17 = sshll.u32 %s963_s13, 4  ;;  %s899_s17 = int_to_ptr.vmem [resolvable:$false] %s898_s17 }
  0x18   : > { %341 = vperm.xlu0 %887, %v331_v3   ;;  %351 = vperm.xlu1 %885, %v333_v5   ;;  %s327_s25 = scalar_lea.vmem %s1185_s0, %s780_s22  ;;  %s321_s22 = sand.u32 1, %s948_s10  }
  0x19   : > { %v329_v28 = vld [vmem:[%s327_s25] sm:$0x3]  ;;  %s779_s23 = sshll.u32 %s321_s22, 1  ;;  %s703_s14 = scalar_lea.sflag [#allocation3], %s321_s22 }
  0x1a   : > { %v357_v31 = vrot.slane %v329_v28, %v356_v26  ;;  %v381_v32 = vrot.slane %v329_v28, %v380_v27  ;;  %s323_s25 = scalar_lea.vmem [#allocation2], %s779_s23  ;;  %s900_s21 = scalar_lea.vmem %s899_s17, 64 }
  0x1b   : > { %s716_s26 = sshll.u32 %s323_s25, 4  ;;  %s1145_s26 = int_to_ptr.vmem [resolvable:$true] %s716_s26 }
  0x1c   : > { %346 = vperm.xlu0 %887, %v332_v0   ;;  %888 = vset.pattern.permute.xlu1 %v958_v2  ;;  %s894_s16 = scalar_lea.vmem %s1145_s26, 32  ;;  %p901_p0 = scmp.lt.s32.totalorder %s1145_s26, %s899_s17 }
  0x1d   : > { %375 = vperm.xlu1 %888, %v333_v5   ;;  %p895_p11 = scmp.ne.s32.totalorder %s1145_s26, %s894_s16  ;;  %p902_p1 = scmp.lt.s32.totalorder %s900_s21, %s894_s16 }
  0x1f   : > { %p896_p12 = pnand %p895_p11, %p1052_p5  ;;  %p903_p2 = por %p902_p1, %p901_p0 }
  0x20   : > { %401 = vperm.xlu0 %887, %v391_v6  }
  0x21   : > { %889 = vset.pattern.permute.xlu1 %v959_v4  ;;  %p897_p13 = pneg %p896_p12 }
  0x22   : > { %396 = vperm.xlu1 %889, %v390_v7  }
  0x23   : > { %p904_p3 = pnand %p903_p2, %p897_p13 }
  0x24   : > { %434 = vperm.xlu0 %887, %v428_v8  }
  0x26   : > { %406 = vperm.xlu1 %889, %v392_v9  }
  0x28   : > { %444 = vperm.xlu0 %887, %v430_v10  }
  0x2a   : > { %411 = vperm.xlu1 %889, %v393_v11  }
  0x2c   : > { %534 = vperm.xlu0 %887, %v528_v12  }
  0x2e   : > { %439 = vperm.xlu1 %889, %v429_v13  }
  0x30   : > { %544 = vperm.xlu0 %887, %v530_v14  }
  0x32   : > { %449 = vperm.xlu1 %889, %v431_v15  }
  0x34   : > { %625 = vperm.xlu0 %887, %v622_v16  }
  0x36   : > { %539 = vperm.xlu1 %889, %v529_v18   ;;  %v960_v18 = vmov 0.0|0.0  }
  0x3a   : > { %549 = vperm.xlu1 %889, %v531_v19   ;;  %v962_v19 = vmov 0.0  }
  0x8e   : > { %v364_v21 = vpop.permute.xlu1 %363  ;;  %v372_v22 = vpop.permute.xlu0 %371 }
  0x8f   : > { %v382_v38 = vmul.f32 %v381_v32, %v364_v21  ;;  %v384_v46 = vmul.f32 %v381_v32, %v372_v22 }
  0x92   : > { %v368_v24 = vpop.permute.xlu1 %367 }
  0x93   : > { %v337_v25 = vpop.permute.xlu0 %336  ;;  %v383_v35 = vmul.f32 %v381_v32, %v368_v24 }
  0x94   : > { %v358_v36 = vmul.f32 %v357_v31, %v337_v25 }
  0x96   : > { %v386_v42 = vadd.f32 %v382_v38, %v358_v36  ;;  %v621_v38 = vld [vmem:[%s1192_s7] sm:$0x3] }
  0x97   : > { %v342_v29 = vpop.permute.xlu0 %341  ;;  %v352_v30 = vpop.permute.xlu1 %351 }
  0x98   : > { %v359_v33 = vmul.f32 %v357_v31, %v342_v29  ;;  %v361_v51 = vmul.f32 %v357_v31, %v352_v30 }
  0x9a   : > { %v387_v39 = vadd.f32 %v383_v35, %v359_v33 }
  0x9b   : > { %v347_v34 = vpop.permute.xlu0 %346 }
  0x9c   : > { %v376_v37 = vpop.permute.xlu1 %375  ;;  %v360_v44 = vmul.f32 %v357_v31, %v347_v34 }
  0x9d   : > { %v385_v47 = vmul.f32 %v381_v32, %v376_v37 }
  0x9e   : > { %v388_v52 = vadd.f32 %v384_v46, %v360_v44 }
  0x9f   : > { %v402_v40 = vpop.permute.xlu0 %401  ;;  %v389_v55 = vadd.f32 %v385_v47, %v361_v51 }
  0xa0   : > { %v415_v41 = vadd.f32 %v402_v40, %v387_v39 }
  0xa1   : > { %v397_v43 = vpop.permute.xlu1 %396 }
  0xa2   : > { %v414_v45 = vadd.f32 %v397_v43, %v386_v42  ;;  %v419_v48 = vmax.f32 %v415_v41, 0.0 }
  0xa3   : > { %v435_v63 = vpop.permute.xlu0 %434 }
  0xa4   : > { %v418_v49 = vmax.f32 %v414_v45, 0.0 }
  0xa5   : > { %v407_v50 = vpop.permute.xlu1 %406 }
  0xa6   : > { %v426_v53 = vpack.c.bf16 %v419_v48, %v418_v49  ;;  %v416_v54 = vadd.f32 %v407_v50, %v388_v52 }
  0xa7   : > { %v445_v1 = vpop.permute.xlu0 %444 }
  0xa8   : > { %807 = vmatprep.subr.bf16.mxu0 %v426_v53  ;;  %v420_v58 = vmax.f32 %v416_v54, 0.0 }
  0xa9   : > { %v412_v56 = vpop.permute.xlu1 %411  ;;  %808 = vmatpush3.bf16.msra.mxu0 %v426_v53 }
  0xaa   : > { %v417_v57 = vadd.f32 %v412_v56, %v389_v55 }
  0xab   : > { %v535_v20 = vpop.permute.xlu0 %534 }
  0xac   : > { %v421_v59 = vmax.f32 %v417_v57, 0.0 }
  0xad   : > { %v440_v0 = vpop.permute.xlu1 %439 }
  0xae   : > { %v427_v60 = vpack.c.bf16 %v421_v59, %v420_v58 }
  0xaf   : > { %v545_v22 = vpop.permute.xlu0 %544 }
  0xb0   : > { %809 = vmatprep.subr.bf16.mxu0 %v427_v60 }
  0xb1   : > { %810 = vmatpush3.bf16.msra.mxu0 %v427_v60  ;;  %v450_v5 = vpop.permute.xlu1 %449 }
  0xb2   : > { %834 = vmatprep.subr.bf16.mxu0 %v960_v18 }
  0xb3   : > { %v626_v39 = vpop.permute.xlu0 %625 }
  0xb4   : > { %812 = vmatmul.mubr.msk.bf16.vlgmr.msra.gmra.mrb[0].mxu0 %vm462_vm0, %v891_v61 }
  0xb5   : > { %831 = vmatprep.mubr.msk.f32.mxu0 %vm961_vm1, %v962_v19  ;;  %v540_v21 = vpop.permute.xlu1 %539 }
  0xb9   : > { %v550_v26 = vpop.permute.xlu1 %549 }
 0x187   : > { %v813_v2 = vpop.f32.mrb[0].mxu0 }
 0x188   : > { %v512_v3 = vadd.f32 %v813_v2, %v445_v1  ;;  %v503_v4 = vpop.f32.mrb[1].mxu0 }
 0x189   : > { %v504_v6 = vadd.f32 %v503_v4, %v435_v63  ;;  %v814_v7 = vpop.f32.mrb[2].mxu0 }
 0x18a   : > { %v515_v8 = vadd.f32 %v814_v7, %v450_v5  ;;  %v506_v9 = vpop.f32.mrb[3].mxu0  ;;  %v520_v11 = vmax.f32 %v512_v3, 0.0 }
 0x18b   : > { %v507_v10 = vadd.f32 %v506_v9, %v440_v0  ;;  %v518_v13 = vmax.f32 %v504_v6, 0.0 }
 0x18c   : > { %v521_v12 = vmax.f32 %v515_v8, 0.0 }
 0x18d   : > { %v519_v14 = vmax.f32 %v507_v10, 0.0 }
 0x18e   : > { %v527_v15 = vpack.c.bf16 %v521_v12, %v520_v11 }
 0x18f   : > { %v526_v16 = vpack.c.bf16 %v519_v14, %v518_v13 }
 0x191   : > { %815 = vmatprep.subr.bf16.mxu1 %v526_v16 }
 0x192   : > { %816 = vmatpush3.bf16.msra.mxu1 %v526_v16 }
 0x193   : > { %817 = vmatprep.subr.bf16.mxu1 %v527_v15 }
 0x196   : > { %818 = vmatpush3.bf16.msra.mxu1 %v527_v15 }
 0x199   : > { %820 = vmatmul.mubr.msk.bf16.vlgmr.msra.gmra.mrb[0].mxu1 %vm462_vm0, %v893_v17 }
 0x26c   : > { %v821_v23 = vpop.f32.mrb[0].mxu1 }
 0x26d   : > { %v611_v24 = vadd.f32 %v821_v23, %v545_v22  ;;  %v602_v25 = vpop.f32.mrb[1].mxu1 }
 0x26e   : > { %v603_v27 = vadd.f32 %v602_v25, %v535_v20  ;;  %v822_v28 = vpop.f32.mrb[2].mxu1 }
 0x26f   : > { %v614_v29 = vadd.f32 %v822_v28, %v550_v26  ;;  %v605_v30 = vpop.f32.mrb[3].mxu1  ;;  %v619_v32 = vmax.f32 %v611_v24, 0.0 }
 0x270   : > { %v606_v31 = vadd.f32 %v605_v30, %v540_v21  ;;  %v617_v34 = vmax.f32 %v603_v27, 0.0 }
 0x271   : > { %v620_v33 = vmax.f32 %v614_v29, 0.0 }
 0x272   : > { %v618_v35 = vmax.f32 %v606_v31, 0.0 }
 0x273   : > { %v838_v36 = vpack.c.bf16 %v620_v33, %v619_v32 }
 0x274   : > { %v835_v37 = vpack.c.bf16 %v618_v35, %v617_v34 }
 0x276   : > { %836 = vmatpush3.bf16.msra.mxu0 %v835_v37 }
 0x277   : > { %837 = vmatprep.subr.bf16.mxu0 %v960_v18 }
 0x27a   : > { %839 = vmatpush3.bf16.msra.mxu0 %v838_v36 }
 0x27d   : > { %832 = vmatmul.mubr.msk.f32.vlgmr.msra.gmra.mrb[4].mxu0 %vm462_vm0, %v621_v38 }
 0x350   : > { %v697_v40 = vpop.f32.mrb[4].mxu0 }
 0x351   : > { %v698_v41 = vadd.f32 %v697_v40, %v626_v39  ;;  %v833_v42 = vpop.f32.mrb[5].mxu0 }
 0x353   : > { %701 = vst [vmem:[%s323_s25] sm:$0x3] %v698_v41 }
 0x354   : > { %907 = shalt.err (!%p904_p3)
}
 0x355   : > { %s908_s22 = scalar_lea.hbm %s1143_s29, 32  ;;  %s912_s25 = scalar_lea.hbm %s1194_s9, 64 }
 0x356   : > { %p909_p4 = scmp.ne.s32.totalorder %s1143_s29, %s908_s22  ;;  %p913_p9 = scmp.lt.u32.totalorder %s1143_s29, %s1194_s9 }
 0x357   : > { %p914_p10 = scmp.lt.u32.totalorder %s912_s25, %s908_s22  ;;  %p916_p12 = scmp.lt.u32.totalorder %s908_s22, %s1143_s29 }
 0x358   : > { %p910_p7 = pnand %p909_p4, %p1052_p5 }
 0x359   : > { %p915_p11 = por %p914_p10, %p913_p9 }
 0x35a   : > { %p911_p8 = pneg %p910_p7 }
 0x35b   : > { %p917_p13 = por %p916_p12, %p915_p11 }
 0x35d   : > { %p918_p0 = pnand %p917_p13, %p911_p8 }
 0x35f   : > { %921 = shalt.err (!%p918_p0)
}
 0x360   : > { %840 = dma.vmem_to_hbm [thread:$0]  (%p1052_p5), %s1145_s26, 32, %s1143_s29, %s703_s14  }
 0x361 PF: > { %p846_p1 = scmp.ge.s32.totalorder %s956_s12, 2  ;;  %s728_s16 = sand.u32 1, %s944_s30  }
 0x362   : > { %s729_s13 = scalar_lea.sflag [#allocation3], %s728_s16 }
 0x363   : > { %p843_p2 = pnand %p846_p1, %p1056_p6 }
 0x365   : > { %939 = dma.done.wait (!%p843_p2), %s729_s13, 32  }
 0x366   : > { %941 = vsyncadd (!%p843_p2), %s729_s13, 4294967264  ;;  %p19_p3 = scmp.ge.s32.totalorder %s1039_s15, 4   ;;  %s1197_s30 = smov %s948_s10 }
 0x367   : > { %s1198_s10 = smov %s952_s11  ;;  %s1199_s11 = smov %s1050_s18 }
 0x368   : > { %s1200_s12 = smov %s1039_s15  ;;  %21 = sbr.rel (!%p19_p3) target bundleno = 3 (0x3), region = 91 }
 0x36f   :  { %734 = vsyncpa [#allocation3], 1 }
 0x370   :  { %736 = vsyncpa [#allocation3 + $0x1], 1 }

</bundles_post_ra>
